<compile_context>
chip_gen: v6e
topology: v6e:2x2x1
jax: 0.10.0
libtpu: 0.0.40
codegen_flags: <defaults>
</compile_context>

<pallas_src>
import functools

import jax
import jax.numpy as jnp
import numpy as np
from jax.experimental import pallas as pl
from jax.experimental.pallas import tpu as pltpu

EXPANSION = 4   # _DenseLayer.expansion
EPS = 1e-5


# --------------------------------------------------------------------------- #
# pltpu.roll direction probe: pin down the rotation convention on this jax
# version so the 3x3 tap shifts are correct regardless of sign convention.
# --------------------------------------------------------------------------- #

def _roll_probe_kernel(x_ref, o_ref):
    o_ref[...] = pltpu.roll(x_ref[...], 1, axis=1)


@functools.lru_cache(maxsize=None)
def _roll_matches_jnp_roll():
    x = jnp.arange(8 * 128, dtype=jnp.float32).reshape(8, 128)
    y = pl.pallas_call(
        _roll_probe_kernel,
        out_shape=jax.ShapeDtypeStruct((8, 128), jnp.float32),
    )(x)
    y = jax.block_until_ready(y)
    if bool(jnp.array_equal(y, jnp.roll(x, 1, axis=1))):
        return True
    if bool(jnp.array_equal(y, jnp.roll(x, -1, axis=1))):
        return False
    raise AssertionError("unrecognized pltpu.roll semantics")


# --------------------------------------------------------------------------- #
# Fused dense-block kernel (one grid step == B_TILE images, all layers)
# --------------------------------------------------------------------------- #

def _make_dense_block_kernel(num_layers, c_in, growth, width, c_final,
                             img_h, img_w, b_tile, roll_matches_jnp):
    hw = img_h * img_w
    lanes = b_tile * hw

    def _shift_amount(s):
        # static lane-roll amount so that shifted[:, p] == h2[:, (p + s) % lanes]
        s = s % lanes
        return (-s) % lanes if roll_matches_jnp else s

    def kernel(*args):
        x_ref, masks_ref = args[0], args[1]
        param_refs = args[2:2 + 6 * num_layers]
        o_ref = args[2 + 6 * num_layers]
        feat_ref = args[2 + 6 * num_layers + 1]   # (c_final, lanes) f32 scratch
        taps_ref = args[2 + 6 * num_layers + 2]   # (9*width, lanes) bf16 scratch

        # Incremental-concat working buffer: copy the B_TILE input images side
        # by side along the lane axis (lane offsets b*hw are multiples of 128).
        # No zero-init: every row of feat_ref is written before it is read.
        for b in range(b_tile):
            feat_ref[0:c_in, b * hw:(b + 1) * hw] = x_ref[b]

        off = c_in
        for i in range(num_layers):
            s1, b1, w1, s2, b2, w2s = param_refs[6 * i:6 * i + 6]
            cin_i = c_in + i * growth

            # ---- BN1 + ReLU + conv1x1 over the TRUE cin_i channels only -----
            feat = feat_ref[0:cin_i, :]                         # (cin_i, lanes) f32
            a1 = jnp.maximum(feat * s1[...] + b1[...], 0.0)
            h1 = jnp.dot(w1[...], a1.astype(jnp.bfloat16),
                         preferred_element_type=jnp.float32)    # (width, lanes)

            # ---- BN2 + ReLU (fused epilogue, stays in VMEM) -----------------
            h2 = jnp.maximum(h1 * s2[...] + b2[...], 0.0)       # (width, lanes) f32

            # ---- conv3x3, padding=1: build the stacked (9*width, lanes) tap
            #      matrix (lane-rolled h2, boundary pixels zeroed by the
            #      pre-broadcast masks), then ONE accumulated MXU dot.
            #      Masking by multiply is exact here (ReLU output is finite). --
            for t in range(9):
                dy, dx = t // 3 - 1, t % 3 - 1
                s = dy * img_w + dx
                lo = t * width
                if s == 0:
                    taps_ref[lo:lo + width, :] = h2.astype(jnp.bfloat16)
                else:
                    rolled = pltpu.roll(h2, _shift_amount(s), axis=1)
                    taps_ref[lo:lo + width, :] = (
                        rolled * masks_ref[lo:lo + width, :]).astype(jnp.bfloat16)

            new = jnp.dot(w2s[...], taps_ref[...],
                          preferred_element_type=jnp.float32)   # (growth, lanes)

            # dropout p=0.0 -> identity.  Write the new growth_rate channels in
            # place (incremental concat, aligned sublane slab).
            feat_ref[off:off + growth, :] = new
            off += growth

        # Write per-image (c_final, hw) slabs to the NCHW-layout output block.
        for b in range(b_tile):
            o_ref[b] = feat_ref[:, b * hw:(b + 1) * hw]

    return kernel


def dense_block_forward(x_nchw, params, images_per_step=None):
    """Pallas implementation. Input/output NCHW, like the PyTorch module."""
    n, c_in, img_h, img_w = x_nchw.shape
    hw = img_h * img_w
    num_layers = len(params)
    growth = params[0]["growth"]
    width = params[0]["width"]
    c_final = c_in + num_layers * growth

    # Layout constraints for the aligned in-place concat / lane-dense pixels.
    assert c_in % 8 == 0 and growth % 8 == 0, "channel slabs must be 8-aligned"
    assert hw % 128 == 0, "H*W must be a multiple of 128 (lane axis)"

    def vmem_estimate(b_tile):
        lanes = b_tile * hw
        x_blk = c_in * lanes * 4
        o_blk = c_final * lanes * 4
        mask_b = 9 * width * lanes * 4
        w_b = 0
        for i in range(num_layers):
            cin_i = c_in + i * growth
            w_b += (2 * cin_i * 4 + width * cin_i * 2
                    + 2 * width * 4 + growth * 9 * width * 2)
        scratch = c_final * lanes * 4 + 9 * width * lanes * 2
        # double-buffered in/out blocks + resident masks/weights + scratch
        return 2 * (x_blk + o_blk) + 2 * mask_b + 2 * w_b + scratch

    if images_per_step is None:
        # Largest batch tile that fits a conservative budget (safe on v7x's
        # 64 MiB VMEM).  NOTE: on v7x, keeping grid length >= 2 lets megacore
        # split the batch; with tiny demo batches we favor lane batching.
        budget = 24 << 20
        images_per_step = 1
        for cand in range(n, 0, -1):
            if n % cand == 0 and cand * hw <= 8192 and vmem_estimate(cand) <= budget:
                images_per_step = cand
                break
    b_tile = images_per_step
    assert n % b_tile == 0
    lanes = b_tile * hw

    # NCHW -> (N, C, H*W); pure reshape, no transpose.
    x3d = x_nchw.reshape(n, c_in, hw).astype(jnp.float32)

    # Pre-broadcast stacked boundary masks: rows [t*width, (t+1)*width) hold the
    # 0/1 validity mask of 3x3 tap t over the flattened pixel index, tiled over
    # the b_tile images sharing the lane axis (so no in-kernel broadcasts and
    # image-seam contamination from rolls is zeroed automatically).
    base = np.zeros((9, hw), np.float32)
    hh = np.arange(img_h)[:, None]
    ww = np.arange(img_w)[None, :]
    for t in range(9):
        dy, dx = t // 3 - 1, t % 3 - 1
        valid = ((hh + dy >= 0) & (hh + dy < img_h) &
                 (ww + dx >= 0) & (ww + dx < img_w))
        base[t] = valid.reshape(-1).astype(np.float32)
    masks = np.repeat(base[:, None, :], width, axis=1).reshape(9 * width, hw)
    masks = np.tile(masks, (1, b_tile))                       # (9*width, lanes)
    masks = jnp.asarray(masks, dtype=jnp.float32)

    kernel = _make_dense_block_kernel(
        num_layers, c_in, growth, width, c_final, img_h, img_w, b_tile,
        roll_matches_jnp=_roll_matches_jnp_roll())

    in_specs = [
        pl.BlockSpec((b_tile, c_in, hw), lambda g: (g, 0, 0)),   # B_TILE images
        pl.BlockSpec((9 * width, lanes), lambda g: (0, 0)),      # stacked masks
    ]
    inputs = [x3d, masks]
    for p in params:
        cin_i = p["cin"]
        in_specs += [
            pl.BlockSpec((cin_i, 1), lambda g: (0, 0)),          # scale1 (unpadded)
            pl.BlockSpec((cin_i, 1), lambda g: (0, 0)),          # shift1 (unpadded)
            pl.BlockSpec((width, cin_i), lambda g: (0, 0)),      # w1^T (unpadded, bf16)
            pl.BlockSpec((width, 1), lambda g: (0, 0)),          # scale2
            pl.BlockSpec((width, 1), lambda g: (0, 0)),          # shift2
            pl.BlockSpec((growth, 9 * width), lambda g: (0, 0)), # stacked 3x3 (bf16)
        ]
        inputs += [p["scale1_k"], p["shift1_k"], p["w1_k"],
                   p["scale2_k"], p["shift2_k"], p["w2_k"]]

    vmem_limit = int(min(max(2 * vmem_estimate(b_tile), 32 << 20), 64 << 20))

    out3d = pl.pallas_call(
        kernel,
        out_shape=jax.ShapeDtypeStruct((n, c_final, hw), jnp.float32),
        grid=(n // b_tile,),
        in_specs=in_specs,
        out_specs=pl.BlockSpec((b_tile, c_final, hw), lambda g: (g, 0, 0)),
        scratch_shapes=[pltpu.VMEM((c_final, lanes), jnp.float32),
                        pltpu.VMEM((9 * width, lanes), jnp.bfloat16)],
        compiler_params=pltpu.CompilerParams(
            dimension_semantics=("parallel",),
            vmem_limit_bytes=vmem_limit),
    )(*inputs)

    # (N, C_final, H*W) -> NCHW, pure reshape.
    return out3d.reshape(n, c_final, img_h, img_w)


# --------------------------------------------------------------------------- #
# Parameters (ABN folded into scale/shift) + pure-JAX reference
# --------------------------------------------------------------------------- #

def init_dense_block_params(key, num_layers, in_planes, growth_rate):
    width = growth_rate * EXPANSION
    params = []
    for i in range(num_layers):
        cin = in_planes + i * growth_rate
        key, *ks = jax.random.split(key, 11)
        gamma1 = jax.random.uniform(ks[0], (cin,), minval=0.5, maxval=1.5)
        beta1 = 0.1 * jax.random.normal(ks[1], (cin,))
        mean1 = 0.1 * jax.random.normal(ks[2], (cin,))
        var1 = jax.random.uniform(ks[3], (cin,), minval=0.5, maxval=1.5)
        w1 = 0.05 * jax.random.normal(ks[4], (cin, width))              # 1x1 conv (Cin, Cout)

        gamma2 = jax.random.uniform(ks[5], (width,), minval=0.5, maxval=1.5)
        beta2 = 0.1 * jax.random.normal(ks[6], (width,))
        mean2 = 0.1 * jax.random.normal(ks[7], (width,))
        var2 = jax.random.uniform(ks[8], (width,), minval=0.5, maxval=1.5)
        w2 = 0.05 * jax.random.normal(ks[9], (3, 3, width, growth_rate))  # HWIO

        scale1 = gamma1 / jnp.sqrt(var1 + EPS)
        shift1 = beta1 - mean1 * scale1
        scale2 = gamma2 / jnp.sqrt(var2 + EPS)
        shift2 = beta2 - mean2 * scale2

        # Stacked-tap 3x3 weight: column index = t*width + c  (t = ky*3 + kx).
        w2_stacked = jnp.transpose(w2.reshape(9, width, growth_rate), (2, 0, 1))
        w2_stacked = w2_stacked.reshape(growth_rate, 9 * width)

        params.append(dict(
            growth=growth_rate, width=width, cin=cin,
            # kernel-side forms (channels on sublanes; bf16 matmul operands)
            scale1_k=scale1.reshape(cin, 1).astype(jnp.float32),
            shift1_k=shift1.reshape(cin, 1).astype(jnp.float32),
            w1_k=jnp.transpose(w1).astype(jnp.bfloat16),                  # (width, cin)
            scale2_k=scale2.reshape(width, 1).astype(jnp.float32),
            shift2_k=shift2.reshape(width, 1).astype(jnp.float32),
            w2_k=w2_stacked.astype(jnp.bfloat16),                         # (growth, 9*width)
            # reference-side forms (f32, original layouts)
            scale1=scale1.astype(jnp.float32), shift1=shift1.astype(jnp.float32),
            w1=w1.astype(jnp.float32),
            scale2=scale2.astype(jnp.float32), shift2=shift2.astype(jnp.float32),
            w2=w2.astype(jnp.float32),
        ))
    return params


def dense_block_reference(x_nchw, params):
    """Pure-JAX f32 reference (matches the PyTorch module math)."""
    x = jnp.transpose(x_nchw, (0, 2, 3, 1)).astype(jnp.float32)   # NHWC
    feats = [x]
    for p in params:
        cat = jnp.concatenate(feats, axis=-1)
        h1 = jnp.maximum(cat * p["scale1"] + p["shift1"], 0.0)
        h1 = jnp.einsum("nhwc,cd->nhwd", h1, p["w1"], precision="highest")
        h2 = jnp.maximum(h1 * p["scale2"] + p["shift2"], 0.0)
        out = jax.lax.conv_general_dilated(
            h2, p["w2"], window_strides=(1, 1), padding="SAME",
            dimension_numbers=("NHWC", "HWIO", "NHWC"),
            precision=jax.lax.Precision.HIGHEST)
        feats.append(out)
    return jnp.transpose(jnp.concatenate(feats, axis=-1), (0, 3, 1, 2))


# ----------------------------------- main ----------------------------------- #

if __name__ == "__main__":
    num_layers, in_planes, growth_rate = 3, 16, 8
    n, hh, ww = 2, 16, 16

    key = jax.random.PRNGKey(0)
    kx, kp = jax.random.split(key)
    x = jax.random.normal(kx, (n, in_planes, hh, ww), dtype=jnp.float32)  # NCHW
    params = init_dense_block_params(kp, num_layers, in_planes, growth_rate)

    out = jax.block_until_ready(dense_block_forward(x, params))

    expected_c = in_planes + num_layers * growth_rate
    assert out.shape == (n, expected_c, hh, ww), out.shape

    ref = jax.block_until_ready(dense_block_reference(x, params))
    max_err = float(jnp.max(jnp.abs(out - ref)))
    assert max_err < 5e-2, f"max abs error {max_err}"

    print("KERNEL_OK")
</pallas_src>

<mosaic_0001>
module attributes {stable_mosaic.version = 11 : i64} {
  func.func @_roll_probe_kernel(%arg0: memref<8x128xf32, #tpu.memory_space<vmem>>, %arg1: memref<8x128xf32, #tpu.memory_space<vmem>>) attributes {dimension_semantics = [], scalar_prefetch = 0 : i64, scratch_operands = 0 : i64, tpu.core_type = #tpu.core_type<tc>} {
    %c0 = arith.constant 0 : index
    %c0_0 = arith.constant 0 : index
    %0 = vector.load %arg0[%c0, %c0_0] : memref<8x128xf32, #tpu.memory_space<vmem>>, vector<8x128xf32>
    %c1_i32 = arith.constant 1 : i32
    %1 = tpu.dynamic_rotate %0 by %c1_i32 dim 1 : vector<8x128xf32>, i32 -> vector<8x128xf32>
    %c0_1 = arith.constant 0 : index
    %c0_2 = arith.constant 0 : index
    %2 = vector.load %arg1[%c0_1, %c0_2] : memref<8x128xf32, #tpu.memory_space<vmem>>, vector<8x128xf32>
    tpu.vector_store %arg1[%c0_1, %c0_2], %1 {strides = array<i32>} : memref<8x128xf32, #tpu.memory_space<vmem>>, vector<8x128xf32>,
    return
  }
}

</mosaic_0001>

<bundles_post_ra>
// kernel: tpu_custom_call.1
= control target key start
LH: loop header
LB: loop body
LE: loop exit
PB: predicated region body
PF: predicated region fallthrough
CT: control target
= control target key end

     0   :  { %6 = vsyncpa [#allocation3], 0  ;;  %s106_s0 = inlined_call_operand.hbm [shape: f32[8,128], index: 0, kind: input, shape index: {}]   ;;  %s107_s1 = inlined_call_operand.hbm [shape: f32[8,128], index: 1, kind: output, shape index: {}]  }
   0x1   :  { %7 = vsyncpa [#allocation4], 0  ;;  %s87_s6 = smov [#allocation2]  }
   0x2   :  { %s14_s7 = sshll.u32 %s87_s6, 4  ;;  %s15_s7 = int_to_ptr.vmem [resolvable:$true] %s14_s7 }
   0x3   :  { %s51_s8 = scalar_lea.vmem %s15_s7, 128  ;;  %p56_p1 = scmp.lt.s32.totalorder %s15_s7, %s15_s7 }
   0x4   :  { %p52_p0 = scmp.ne.s32.totalorder %s15_s7, %s51_s8  ;;  %p57_p2 = scmp.lt.s32.totalorder %s51_s8, %s51_s8 }
   0x6   :  { %p58_p3 = por %p57_p2, %p56_p1 }
   0x8   :  { %p59_p4 = pnand %p58_p3, %p52_p0 }
   0xa   :  { %62 = shalt.err (!%p59_p4)
}
   0xb   :  { %17 = dma.hbm_to_vmem [thread:$0]  %s106_s0, 128, %s15_s7, [#allocation3]  }
   0xc   :  { %83 = dma.done.wait [#allocation3], 128  }
   0xd   :  { %84 = vsyncadd [#allocation3], 4294967168  ;;  %v21_v0 = vld [vmem:[#allocation2] sm:$0xff]  ;;  %s88_s11 = smov 1   ;;  %s89_s12 = smov [#allocation5]  }
   0xe   :  { %22 = vrot.lane.b32.xlu0 %v21_v0, %s88_s11  ;;  %s31_s13 = sshll.u32 %s89_s12, 4  ;;  %s32_s13 = int_to_ptr.vmem [resolvable:$true] %s31_s13 }
   0xf   :  { %s63_s14 = scalar_lea.vmem %s32_s13, 128  ;;  %p68_p6 = scmp.lt.s32.totalorder %s32_s13, %s32_s13 }
  0x10   :  { %p64_p5 = scmp.ne.s32.totalorder %s32_s13, %s63_s14  ;;  %p69_p7 = scmp.lt.s32.totalorder %s63_s14, %s63_s14 }
  0x12   :  { %p70_p8 = por %p69_p7, %p68_p6 }
  0x14   :  { %p71_p9 = pnand %p70_p8, %p64_p5 }
  0x80   :  { %v23_v1 = vpop.permute.xlu0 %22 }
  0x81   :  { %24 = vst [vmem:[#allocation5] sm:$0xff] %v23_v1 }
  0x82   :  { %74 = shalt.err (!%p71_p9)
}
  0x83   :  { %34 = dma.vmem_to_hbm [thread:$0]  %s32_s13, 128, %s107_s1, [#allocation4]  }
  0x84   :  { %85 = dma.done.wait [#allocation4], 128  }
  0x85   :  { %86 = vsyncadd [#allocation4], 4294967168 }
  0x86   :  { %38 = vsyncpa [#allocation3], 1 }
  0x87   :  { %39 = vsyncpa [#allocation4], 1 }

</bundles_post_ra>
